<compile_context>
chip_gen: v7x
topology: tpu7x:2x2x1
jax: 0.10.0
libtpu: 0.0.40
codegen_flags: <defaults>
</compile_context>

<pallas_src>
import functools

import jax
import jax.numpy as jnp
from jax import lax
from jax.experimental import pallas as pl
from jax.experimental.pallas import tpu as pltpu


def _conv1d_block_kernel(x_ref, w_ref, b_ref, g_ref, beta_ref, s_ref, bm_ref,
                         o_ref, xpad_ref, *, kernel_size, padding, eps,
                         approx_recip):
    # x_ref    : (bt, L, C_in)        input rows (compute dtype)
    # w_ref    : (K, C_in, C_out)     conv weight, one (C_in, C_out) slab per tap
    # b_ref    : (1, C_out)           conv bias (f32)
    # g_ref    : (1, C_out)           GroupNorm gamma (f32)
    # beta_ref : (1, C_out)           GroupNorm beta (f32)
    # s_ref    : (C_out, G)           one-hot group-membership matrix (f32)
    # bm_ref   : (G, C_out)           group->channel broadcast, scaled 1/(cpg*L_out)
    # o_ref    : (bt, L_out, C_out)   output rows
    # xpad_ref : (bt, L+2*pad, C_in)  VMEM scratch: zero-padded input slab
    bt, l_in, c_in = x_ref.shape
    _, l_out, c_out = o_ref.shape
    m = bt * l_out

    # ---- in-kernel halo padding: zero ONLY the halo rows; the interior is
    #      fully overwritten every grid step (no full-slab re-zeroing). ----
    if padding > 0:
        halo = jnp.zeros((bt, padding, c_in), xpad_ref.dtype)
        xpad_ref[:, :padding, :] = halo
        xpad_ref[:, padding + l_in:, :] = halo
    xpad_ref[:, padding:padding + l_in, :] = x_ref[...]

    # ---- Conv1d: K accumulating MXU contractions, batch tile fused into one
    #      M = bt*L_out matmul per tap (no im2col slab, no extra VMEM stores).
    acc = jnp.zeros((m, c_out), jnp.float32)
    for k in range(kernel_size):          # K is tiny (3); static unroll is fine
        win = xpad_ref[:, k:k + l_out, :].reshape(m, c_in)
        acc = acc + jnp.dot(win, w_ref[k], preferred_element_type=jnp.float32)
    acc = acc + b_ref[...]                                  # (1, C_out) broadcast
    acc = acc.reshape(bt, l_out, c_out)

    # ---- GroupNorm: two-pass, per-(sample, group) stats.  Group averaging is
    #      (bt,C_out)@(C_out,G) then (bt,G)@(G,C_out); the 1/(cpg*L_out) scale
    #      is folded into bm_ref.  No O(C_out^2) constant in VMEM. ----
    ch_sum = jnp.sum(acc, axis=1)                           # (bt, C_out)
    mean_c = jnp.dot(jnp.dot(ch_sum, s_ref[...],
                             preferred_element_type=jnp.float32),
                     bm_ref[...], preferred_element_type=jnp.float32)
    cent = acc - mean_c[:, None, :]
    sq_sum = jnp.sum(cent * cent, axis=1)                   # (bt, C_out)
    var_c = jnp.dot(jnp.dot(sq_sum, s_ref[...],
                            preferred_element_type=jnp.float32),
                    bm_ref[...], preferred_element_type=jnp.float32)
    y = cent * lax.rsqrt(var_c[:, None, :] + eps)
    y = y * g_ref[...] + beta_ref[...]

    # ---- Mish: y*tanh(softplus(y)) == y - 2y/(t^2 + 2t + 2), t = e^y ----
    # t = inf -> inv = 0 -> result y  (tanh(inf)=1);  t -> 0 -> result -> 0.
    t = jnp.exp(y)
    denom = t * (t + 2.0) + 2.0
    if approx_recip:
        inv = pl.reciprocal(denom, approx=True)             # EUP slot, free-ish
    else:
        inv = 1.0 / denom
    o_ref[...] = (y - 2.0 * y * inv).astype(o_ref.dtype)


def conv1d_block(x, w, b, gamma, beta, *, kernel_size, n_groups, padding=1,
                 eps=1e-5, compute_dtype=jnp.bfloat16, batch_tile=1,
                 out_dtype=jnp.float32):
    """Conv1d(padding=1) -> GroupNorm(n_groups) -> Mish.  NCL in / NCL out.

    batch_tile: samples folded into one grid step (one fused contraction).
    Keep B // batch_tile >= 2 so both v7x TensorCores get work and the
    input/output DMAs stay pipelined.
    """
    B, c_in, L = x.shape
    c_out = w.shape[0]
    assert w.shape == (c_out, c_in, kernel_size)
    assert c_out % n_groups == 0, "n_groups must divide out_channels"
    assert B % batch_tile == 0, "batch_tile must divide batch"
    cpg = c_out // n_groups
    l_out = L + 2 * padding - kernel_size + 1
    l_pad = L + 2 * padding

    # Layout plumbing (one-time XLA ops): rows = spatial, lanes = channels.
    # x is cast to compute_dtype here so the kernel's HBM fetch is already
    # half-width on the bf16 path.
    x_rows = jnp.transpose(x, (0, 2, 1)).astype(compute_dtype)      # (B, L, C_in)
    w_stack = jnp.transpose(w, (2, 1, 0)).astype(compute_dtype)     # (K, C_in, C_out)
    b2 = b.reshape(1, c_out).astype(jnp.float32)
    g2 = gamma.reshape(1, c_out).astype(jnp.float32)
    be2 = beta.reshape(1, c_out).astype(jnp.float32)
    # Group-sum (C_out, G) and scaled group-broadcast (G, C_out) matrices,
    # built once in the wrapper (constant index_map, O(C_out*G) bytes).
    gidx = jnp.arange(c_out, dtype=jnp.int32) // cpg
    s_mat = (gidx[:, None] == jnp.arange(n_groups, dtype=jnp.int32)[None, :]
             ).astype(jnp.float32)                                   # (C_out, G)
    bm_mat = s_mat.T / float(cpg * l_out)                            # (G, C_out)

    kernel = functools.partial(
        _conv1d_block_kernel, kernel_size=kernel_size, padding=padding,
        eps=float(eps), approx_recip=(compute_dtype != jnp.float32))

    out_rows = pl.pallas_call(
        kernel,
        out_shape=jax.ShapeDtypeStruct((B, l_out, c_out), out_dtype),
        grid=(B // batch_tile,),
        in_specs=[
            pl.BlockSpec((batch_tile, L, c_in), lambda bi: (bi, 0, 0)),
            pl.BlockSpec((kernel_size, c_in, c_out), lambda bi: (0, 0, 0)),
            pl.BlockSpec((1, c_out), lambda bi: (0, 0)),
            pl.BlockSpec((1, c_out), lambda bi: (0, 0)),
            pl.BlockSpec((1, c_out), lambda bi: (0, 0)),
            pl.BlockSpec((c_out, n_groups), lambda bi: (0, 0)),
            pl.BlockSpec((n_groups, c_out), lambda bi: (0, 0)),
        ],
        out_specs=pl.BlockSpec((batch_tile, l_out, c_out), lambda bi: (bi, 0, 0)),
        scratch_shapes=[
            # padded-input slab in compute dtype (bf16 on the MXU path)
            pltpu.VMEM((batch_tile, l_pad, c_in), compute_dtype),
        ],
        compiler_params=pltpu.CompilerParams(
            dimension_semantics=("parallel",),
            # 48 MiB keeps headroom on v7x's 64-MiB physical VMEM per core.
            vmem_limit_bytes=48 * 1024 * 1024),
    )(x_rows, w_stack, b2, g2, be2, s_mat, bm_mat)

    # Back to PyTorch's (B, C_out, L_out) convention.  If the consumer accepts
    # channels-last, return out_rows directly and skip this HBM pass.
    # TODO(synk): lane-dense repack (flatten L_out*C_out onto lanes) when
    # C_out < 128 would avoid masked stores; needs a consumer-side layout change.
    return jnp.transpose(out_rows, (0, 2, 1))


def ref_forward(x, w, b, gamma, beta, *, kernel_size, n_groups,
                padding=1, eps=1e-5):
    """Pure-JAX reference matching PyTorch Conv1d -> GroupNorm -> Mish."""
    y = lax.conv_general_dilated(
        x, w, window_strides=(1,), padding=[(padding, padding)],
        dimension_numbers=("NCH", "OIH", "NCH"))
    y = y + b[None, :, None]
    B, C, L = y.shape
    yg = y.reshape(B, n_groups, C // n_groups, L)
    mean = yg.mean(axis=(2, 3), keepdims=True)
    var = yg.var(axis=(2, 3), keepdims=True)        # biased, like PyTorch
    yn = (yg - mean) / jnp.sqrt(var + eps)
    yn = yn.reshape(B, C, L) * gamma[None, :, None] + beta[None, :, None]
    return yn * jnp.tanh(jax.nn.softplus(yn))


if __name__ == "__main__":
    B, C_IN, C_OUT, K, L, G = 4, 4, 8, 3, 16, 4   # n_groups=4 divides out_channels=8

    key = jax.random.PRNGKey(0)
    k1, k2, k3, k4, k5 = jax.random.split(key, 5)
    x = jax.random.normal(k1, (B, C_IN, L), jnp.float32)
    w = 0.2 * jax.random.normal(k2, (C_OUT, C_IN, K), jnp.float32)    # Conv1d weight
    b = 0.1 * jax.random.normal(k3, (C_OUT,), jnp.float32)            # Conv1d bias
    gamma = 1.0 + 0.1 * jax.random.normal(k4, (C_OUT,), jnp.float32)  # GroupNorm weight
    beta = 0.1 * jax.random.normal(k5, (C_OUT,), jnp.float32)         # GroupNorm bias

    ref = ref_forward(x, w, b, gamma, beta, kernel_size=K, n_groups=G)

    # f32 matmul path: tight numerical check, batch_tile=1 -> grid=(4,)
    # ("parallel" grid: both v7x TensorCores busy, DMAs pipelined).
    out_f32 = conv1d_block(x, w, b, gamma, beta, kernel_size=K, n_groups=G,
                           compute_dtype=jnp.float32, batch_tile=1)
    out_f32 = jax.block_until_ready(out_f32)
    assert out_f32.shape == (B, C_OUT, L)
    assert jnp.allclose(out_f32, ref, atol=1e-4, rtol=1e-4), "f32 mismatch vs reference"

    # bf16 matmul path (v6e/v7x MXU-native, f32 accumulate): batch_tile=2 so
    # two samples fuse into one contraction while the grid stays >= 2 steps.
    out_bf16 = conv1d_block(x, w, b, gamma, beta, kernel_size=K, n_groups=G,
                            compute_dtype=jnp.bfloat16, batch_tile=2)
    out_bf16 = jax.block_until_ready(out_bf16)
    assert out_bf16.shape == (B, C_OUT, L)
    assert jnp.allclose(out_bf16, ref, atol=5e-2, rtol=5e-2), "bf16 mismatch vs reference"

    print("KERNEL_OK")
</pallas_src>

<mosaic_0001>
module attributes {stable_mosaic.version = 11 : i64} {
  func.func @_conv1d_block_kernel(%arg0: i32, %arg1: memref<1x16x4xf32, #tpu.memory_space<vmem>>, %arg2: memref<3x4x8xf32, #tpu.memory_space<vmem>>, %arg3: memref<1x8xf32, #tpu.memory_space<vmem>>, %arg4: memref<1x8xf32, #tpu.memory_space<vmem>>, %arg5: memref<1x8xf32, #tpu.memory_space<vmem>>, %arg6: memref<8x4xf32, #tpu.memory_space<vmem>>, %arg7: memref<4x8xf32, #tpu.memory_space<vmem>>, %arg8: memref<1x16x8xf32, #tpu.memory_space<vmem>>, %arg9: memref<1x18x4xf32, #tpu.memory_space<vmem>>) attributes {dimension_semantics = [#tpu.dimension_semantics<parallel>], iteration_bounds = array<i64: 4>, scalar_prefetch = 0 : i64, scratch_operands = 1 : i64, tpu.core_type = #tpu.core_type<tc>, window_params = [{transform_indices = @transform_0, window_bounds = array<i64: 1, 16, 4>}, {pipeline_mode = #tpu.pipeline_mode<synchronous>, transform_indices = @transform_1, window_bounds = array<i64: 3, 4, 8>}, {pipeline_mode = #tpu.pipeline_mode<synchronous>, transform_indices = @transform_2, window_bounds = array<i64: 1, 8>}, {pipeline_mode = #tpu.pipeline_mode<synchronous>, transform_indices = @transform_3, window_bounds = array<i64: 1, 8>}, {pipeline_mode = #tpu.pipeline_mode<synchronous>, transform_indices = @transform_4, window_bounds = array<i64: 1, 8>}, {pipeline_mode = #tpu.pipeline_mode<synchronous>, transform_indices = @transform_5, window_bounds = array<i64: 8, 4>}, {pipeline_mode = #tpu.pipeline_mode<synchronous>, transform_indices = @transform_6, window_bounds = array<i64: 4, 8>}, {transform_indices = @transform_7, window_bounds = array<i64: 1, 16, 8>}]} {
    %cst = arith.constant 0.000000e+00 : f32
    %0 = vector.broadcast %cst : f32 to vector<1x1x4xf32>
    %c0 = arith.constant 0 : index
    %c0_0 = arith.constant 0 : index
    %c0_1 = arith.constant 0 : index
    %1 = vector.load %arg9[%c0, %c0_0, %c0_1] : memref<1x18x4xf32, #tpu.memory_space<vmem>>, vector<1x1x4xf32>
    tpu.vector_store %arg9[%c0, %c0_0, %c0_1], %0 {strides = array<i32>} : memref<1x18x4xf32, #tpu.memory_space<vmem>>, vector<1x1x4xf32>,
    %c0_2 = arith.constant 0 : index
    %c17 = arith.constant 17 : index
    %c0_3 = arith.constant 0 : index
    %2 = vector.load %arg9[%c0_2, %c17, %c0_3] : memref<1x18x4xf32, #tpu.memory_space<vmem>>, vector<1x1x4xf32>
    tpu.vector_store %arg9[%c0_2, %c17, %c0_3], %0 {strides = array<i32>} : memref<1x18x4xf32, #tpu.memory_space<vmem>>, vector<1x1x4xf32>,
    %c0_4 = arith.constant 0 : index
    %c0_5 = arith.constant 0 : index
    %c0_6 = arith.constant 0 : index
    %3 = vector.load %arg1[%c0_4, %c0_5, %c0_6] : memref<1x16x4xf32, #tpu.memory_space<vmem>>, vector<1x16x4xf32>
    %c0_7 = arith.constant 0 : index
    %c1 = arith.constant 1 : index
    %c0_8 = arith.constant 0 : index
    %4 = vector.load %arg9[%c0_7, %c1, %c0_8] : memref<1x18x4xf32, #tpu.memory_space<vmem>>, vector<1x16x4xf32>
    tpu.vector_store %arg9[%c0_7, %c1, %c0_8], %3 {strides = array<i32>} : memref<1x18x4xf32, #tpu.memory_space<vmem>>, vector<1x16x4xf32>,
    %cst_9 = arith.constant 0.000000e+00 : f32
    %5 = vector.broadcast %cst_9 : f32 to vector<16x8xf32>
    %c0_10 = arith.constant 0 : index
    %c0_11 = arith.constant 0 : index
    %c0_12 = arith.constant 0 : index
    %6 = vector.load %arg9[%c0_10, %c0_11, %c0_12] : memref<1x18x4xf32, #tpu.memory_space<vmem>>, vector<1x16x4xf32>
    %7 = vector.shape_cast %6 : vector<1x16x4xf32> to vector<16x4xf32>
    %c0_13 = arith.constant 0 : index
    %c0_14 = arith.constant 0 : index
    %c0_15 = arith.constant 0 : index
    %8 = vector.load %arg2[%c0_13, %c0_14, %c0_15] : memref<3x4x8xf32, #tpu.memory_space<vmem>>, vector<1x4x8xf32>
    %9 = vector.shape_cast %8 : vector<1x4x8xf32> to vector<4x8xf32>
    %cst_16 = arith.constant dense<0.000000e+00> : vector<16x8xf32>
    %10 = tpu.matmul %7, %9, %cst_16 {dimension_numbers = #tpu.dot_dimension_numbers<[1], [0], [0], [1], [0, 0, 1, 1], [], []>} : vector<16x4xf32>, vector<4x8xf32>, vector<16x8xf32> -> vector<16x8xf32>
    %11 = arith.addf %5, %10 : vector<16x8xf32>
    %c0_17 = arith.constant 0 : index
    %c1_18 = arith.constant 1 : index
    %c0_19 = arith.constant 0 : index
    %12 = vector.load %arg9[%c0_17, %c1_18, %c0_19] : memref<1x18x4xf32, #tpu.memory_space<vmem>>, vector<1x16x4xf32>
    %13 = vector.shape_cast %12 : vector<1x16x4xf32> to vector<16x4xf32>
    %c1_20 = arith.constant 1 : index
    %c0_21 = arith.constant 0 : index
    %c0_22 = arith.constant 0 : index
    %14 = vector.load %arg2[%c1_20, %c0_21, %c0_22] : memref<3x4x8xf32, #tpu.memory_space<vmem>>, vector<1x4x8xf32>
    %15 = vector.shape_cast %14 : vector<1x4x8xf32> to vector<4x8xf32>
    %cst_23 = arith.constant dense<0.000000e+00> : vector<16x8xf32>
    %16 = tpu.matmul %13, %15, %cst_23 {dimension_numbers = #tpu.dot_dimension_numbers<[1], [0], [0], [1], [0, 0, 1, 1], [], []>} : vector<16x4xf32>, vector<4x8xf32>, vector<16x8xf32> -> vector<16x8xf32>
    %17 = arith.addf %11, %16 : vector<16x8xf32>
    %c0_24 = arith.constant 0 : index
    %c2 = arith.constant 2 : index
    %c0_25 = arith.constant 0 : index
    %18 = vector.load %arg9[%c0_24, %c2, %c0_25] : memref<1x18x4xf32, #tpu.memory_space<vmem>>, vector<1x16x4xf32>
    %19 = vector.shape_cast %18 : vector<1x16x4xf32> to vector<16x4xf32>
    %c2_26 = arith.constant 2 : index
    %c0_27 = arith.constant 0 : index
    %c0_28 = arith.constant 0 : index
    %20 = vector.load %arg2[%c2_26, %c0_27, %c0_28] : memref<3x4x8xf32, #tpu.memory_space<vmem>>, vector<1x4x8xf32>
    %21 = vector.shape_cast %20 : vector<1x4x8xf32> to vector<4x8xf32>
    %cst_29 = arith.constant dense<0.000000e+00> : vector<16x8xf32>
    %22 = tpu.matmul %19, %21, %cst_29 {dimension_numbers = #tpu.dot_dimension_numbers<[1], [0], [0], [1], [0, 0, 1, 1], [], []>} : vector<16x4xf32>, vector<4x8xf32>, vector<16x8xf32> -> vector<16x8xf32>
    %23 = arith.addf %17, %22 : vector<16x8xf32>
    %c0_30 = arith.constant 0 : index
    %c0_31 = arith.constant 0 : index
    %24 = vector.load %arg3[%c0_30, %c0_31] : memref<1x8xf32, #tpu.memory_space<vmem>>, vector<1x8xf32>
    %25 = vector.broadcast %24 : vector<1x8xf32> to vector<16x8xf32>
    %26 = arith.addf %23, %25 : vector<16x8xf32>
    %27 = vector.shape_cast %26 : vector<16x8xf32> to vector<1x16x8xf32>
    %cst_32 = arith.constant dense<0.000000e+00> : vector<1x8xf32>
    %28 = vector.multi_reduction <add>, %27, %cst_32 [1] : vector<1x16x8xf32> to vector<1x8xf32>
    %c0_33 = arith.constant 0 : index
    %c0_34 = arith.constant 0 : index
    %29 = vector.load %arg6[%c0_33, %c0_34] : memref<8x4xf32, #tpu.memory_space<vmem>>, vector<8x4xf32>
    %cst_35 = arith.constant dense<0.000000e+00> : vector<1x4xf32>
    %30 = tpu.matmul %28, %29, %cst_35 {dimension_numbers = #tpu.dot_dimension_numbers<[1], [0], [0], [1], [0, 0, 1, 1], [], []>} : vector<1x8xf32>, vector<8x4xf32>, vector<1x4xf32> -> vector<1x4xf32>
    %c0_36 = arith.constant 0 : index
    %c0_37 = arith.constant 0 : index
    %31 = vector.load %arg7[%c0_36, %c0_37] : memref<4x8xf32, #tpu.memory_space<vmem>>, vector<4x8xf32>
    %cst_38 = arith.constant dense<0.000000e+00> : vector<1x8xf32>
    %32 = tpu.matmul %30, %31, %cst_38 {dimension_numbers = #tpu.dot_dimension_numbers<[1], [0], [0], [1], [0, 0, 1, 1], [], []>} : vector<1x4xf32>, vector<4x8xf32>, vector<1x8xf32> -> vector<1x8xf32>
    %33 = vector.shape_cast %32 : vector<1x8xf32> to vector<1x1x8xf32>
    %34 = vector.broadcast %33 : vector<1x1x8xf32> to vector<1x16x8xf32>
    %35 = arith.subf %27, %34 : vector<1x16x8xf32>
    %36 = arith.mulf %35, %35 : vector<1x16x8xf32>
    %cst_39 = arith.constant dense<0.000000e+00> : vector<1x8xf32>
    %37 = vector.multi_reduction <add>, %36, %cst_39 [1] : vector<1x16x8xf32> to vector<1x8xf32>
    %c0_40 = arith.constant 0 : index
    %c0_41 = arith.constant 0 : index
    %38 = vector.load %arg6[%c0_40, %c0_41] : memref<8x4xf32, #tpu.memory_space<vmem>>, vector<8x4xf32>
    %cst_42 = arith.constant dense<0.000000e+00> : vector<1x4xf32>
    %39 = tpu.matmul %37, %38, %cst_42 {dimension_numbers = #tpu.dot_dimension_numbers<[1], [0], [0], [1], [0, 0, 1, 1], [], []>} : vector<1x8xf32>, vector<8x4xf32>, vector<1x4xf32> -> vector<1x4xf32>
    %c0_43 = arith.constant 0 : index
    %c0_44 = arith.constant 0 : index
    %40 = vector.load %arg7[%c0_43, %c0_44] : memref<4x8xf32, #tpu.memory_space<vmem>>, vector<4x8xf32>
    %cst_45 = arith.constant dense<0.000000e+00> : vector<1x8xf32>
    %41 = tpu.matmul %39, %40, %cst_45 {dimension_numbers = #tpu.dot_dimension_numbers<[1], [0], [0], [1], [0, 0, 1, 1], [], []>} : vector<1x4xf32>, vector<4x8xf32>, vector<1x8xf32> -> vector<1x8xf32>
    %42 = vector.shape_cast %41 : vector<1x8xf32> to vector<1x1x8xf32>
    %cst_46 = arith.constant 9.99999974E-6 : f32
    %43 = vector.broadcast %cst_46 : f32 to vector<1x1x8xf32>
    %44 = arith.addf %42, %43 : vector<1x1x8xf32>
    %45 = math.rsqrt %44 : vector<1x1x8xf32>
    %46 = vector.broadcast %45 : vector<1x1x8xf32> to vector<1x16x8xf32>
    %47 = arith.mulf %35, %46 : vector<1x16x8xf32>
    %c0_47 = arith.constant 0 : index
    %c0_48 = arith.constant 0 : index
    %48 = vector.load %arg4[%c0_47, %c0_48] : memref<1x8xf32, #tpu.memory_space<vmem>>, vector<1x8xf32>
    %49 = vector.shape_cast %48 : vector<1x8xf32> to vector<1x1x8xf32>
    %50 = vector.broadcast %49 : vector<1x1x8xf32> to vector<1x16x8xf32>
    %51 = arith.mulf %47, %50 : vector<1x16x8xf32>
    %c0_49 = arith.constant 0 : index
    %c0_50 = arith.constant 0 : index
    %52 = vector.load %arg5[%c0_49, %c0_50] : memref<1x8xf32, #tpu.memory_space<vmem>>, vector<1x8xf32>
    %53 = vector.shape_cast %52 : vector<1x8xf32> to vector<1x1x8xf32>
    %54 = vector.broadcast %53 : vector<1x1x8xf32> to vector<1x16x8xf32>
    %55 = arith.addf %51, %54 : vector<1x16x8xf32>
    %56 = math.exp %55 : vector<1x16x8xf32>
    %cst_51 = arith.constant 2.000000e+00 : f32
    %57 = vector.broadcast %cst_51 : f32 to vector<1x16x8xf32>
    %58 = arith.addf %56, %57 : vector<1x16x8xf32>
    %59 = arith.mulf %56, %58 : vector<1x16x8xf32>
    %cst_52 = arith.constant 2.000000e+00 : f32
    %60 = vector.broadcast %cst_52 : f32 to vector<1x16x8xf32>
    %61 = arith.addf %59, %60 : vector<1x16x8xf32>
    %cst_53 = arith.constant 1.000000e+00 : f32
    %62 = vector.broadcast %cst_53 : f32 to vector<1x16x8xf32>
    %63 = arith.divf %62, %61 : vector<1x16x8xf32>
    %cst_54 = arith.constant 2.000000e+00 : f32
    %64 = vector.broadcast %cst_54 : f32 to vector<1x16x8xf32>
    %65 = arith.mulf %64, %55 : vector<1x16x8xf32>
    %66 = arith.mulf %65, %63 : vector<1x16x8xf32>
    %67 = arith.subf %55, %66 : vector<1x16x8xf32>
    %c0_55 = arith.constant 0 : index
    %c0_56 = arith.constant 0 : index
    %c0_57 = arith.constant 0 : index
    %68 = vector.load %arg8[%c0_55, %c0_56, %c0_57] : memref<1x16x8xf32, #tpu.memory_space<vmem>>, vector<1x16x8xf32>
    tpu.vector_store %arg8[%c0_55, %c0_56, %c0_57], %67 {strides = array<i32>} : memref<1x16x8xf32, #tpu.memory_space<vmem>>, vector<1x16x8xf32>,
    return
  }
  func.func @transform_0(%arg0: i32) -> (i32, i32, i32) {
    %c0_i32 = arith.constant 0 : i32
    %c0_i32_0 = arith.constant 0 : i32
    %c0_i32_1 = arith.constant 0 : i32
    return %arg0, %c0_i32, %c0_i32_0 : i32, i32, i32
  }
  func.func @transform_1(%arg0: i32) -> (i32, i32, i32) {
    %c0_i32 = arith.constant 0 : i32
    %c0_i32_0 = arith.constant 0 : i32
    %c0_i32_1 = arith.constant 0 : i32
    %c0_i32_2 = arith.constant 0 : i32
    return %c0_i32, %c0_i32_0, %c0_i32_1 : i32, i32, i32
  }
  func.func @transform_2(%arg0: i32) -> (i32, i32) {
    %c0_i32 = arith.constant 0 : i32
    %c0_i32_0 = arith.constant 0 : i32
    %c0_i32_1 = arith.constant 0 : i32
    return %c0_i32, %c0_i32_0 : i32, i32
  }
  func.func @transform_3(%arg0: i32) -> (i32, i32) {
    %c0_i32 = arith.constant 0 : i32
    %c0_i32_0 = arith.constant 0 : i32
    %c0_i32_1 = arith.constant 0 : i32
    return %c0_i32, %c0_i32_0 : i32, i32
  }
  func.func @transform_4(%arg0: i32) -> (i32, i32) {
    %c0_i32 = arith.constant 0 : i32
    %c0_i32_0 = arith.constant 0 : i32
    %c0_i32_1 = arith.constant 0 : i32
    return %c0_i32, %c0_i32_0 : i32, i32
  }
  func.func @transform_5(%arg0: i32) -> (i32, i32) {
    %c0_i32 = arith.constant 0 : i32
    %c0_i32_0 = arith.constant 0 : i32
    %c0_i32_1 = arith.constant 0 : i32
    return %c0_i32, %c0_i32_0 : i32, i32
  }
  func.func @transform_6(%arg0: i32) -> (i32, i32) {
    %c0_i32 = arith.constant 0 : i32
    %c0_i32_0 = arith.constant 0 : i32
    %c0_i32_1 = arith.constant 0 : i32
    return %c0_i32, %c0_i32_0 : i32, i32
  }
  func.func @transform_7(%arg0: i32) -> (i32, i32, i32) {
    %c0_i32 = arith.constant 0 : i32
    %c0_i32_0 = arith.constant 0 : i32
    %c0_i32_1 = arith.constant 0 : i32
    return %arg0, %c0_i32, %c0_i32_0 : i32, i32, i32
  }
}

</mosaic_0001>

<bundles_post_ra>
// kernel: tpu_custom_call.1
= control target key start
LH: loop header
LB: loop body
LE: loop exit
PB: predicated region body
PF: predicated region fallthrough
CT: control target
= control target key end

     0   :  { %s1148_s24 = smov 0   ;;  %s1226_s0 = inlined_call_operand.vmem [shape: f32[4,16,4], index: 0, kind: input, shape index: {}]   ;;  %s1227_s1 = inlined_call_operand.vmem [shape: f32[3,4,8], index: 1, kind: input, shape index: {}]   ;;  %s1228_s2 = inlined_call_operand.vmem [shape: f32[1,8], index: 2, kind: input, shape index: {}]   ;;  %s1229_s3 = inlined_call_operand.vmem [shape: f32[1,8], index: 3, kind: input, shape index: {}]   ;;  %s1230_s4 = inlined_call_operand.vmem [shape: f32[1,8], index: 4, kind: input, shape index: {}]   ;;  %s1231_s5 = inlined_call_operand.vmem [shape: f32[8,4], index: 5, kind: input, shape index: {}]   ;;  %s1232_s6 = inlined_call_operand.vmem [shape: f32[4,8], index: 6, kind: input, shape index: {}]   ;;  %s1233_s7 = inlined_call_operand.vmem [shape: f32[4,16,8], index: 7, kind: output, shape index: {}]  }
   0x1 LB: > { %s989_s25 = sadd.s32 4294967295, %s1104_s24   ;;  %p993_p0 = scmp.ge.s32.totalorder %s1104_s24, 1  ;;  %s1104_s24 = sphi %s1148_s24, %s17_s24  }
   0x2   : > { %p237_p1 = scmp.lt.s32.totalorder %s1104_s24, 5 }
   0x4   : > { %p238_p2 = pnand %p993_p0, %p237_p1 }
   0x5   : > { %v998_v0 = vld [vmem:[%s1227_s1 + $0x4] sm:$0xf] (!%p238_p2)  ;;  %vm300_vm0 = vcmask (!%p238_p2), 1043456   ;;  %p269_p3 = scmp.lt.s32.totalorder (!%p238_p2), %s989_s25, 3  ;;  %vm279_vm1 = vcmask (!%p238_p2), 24576   ;;  %v1106_v2 = vmov (!%p238_p2), 0.0   ;;  %v723_v30 = vlaneseq (!%p238_p2) }
   0x6   : > { %241 = sbr.rel (%p238_p2) target bundleno = 1198 (0x4ae), region = 48  ;;  %1039 = vmatprep.subr.msk.mxu0 (!%p238_p2), %vm300_vm0, %v998_v0  ;;  %v289_v1 = vld [vmem:[%s1227_s1] sm:$0xf] (!%p238_p2)  ;;  %280 = vst.msk [vmem:[#allocation2] sm:$0x1] (!%p238_p2), %vm279_vm1, %v1106_v2  ;;  %1054 = vmatprep.subr.mxu1 (!%p238_p2), %v1106_v2  ;;  %vm284_vm2 = vcmask (!%p238_p2), 31744  }
   0x7   : > { %1040 = vmatpush3.msk.msra.mxu0 (!%p238_p2), %vm300_vm0, %v998_v0  ;;  %281 = vst.msk [vmem:[#allocation2 + $0x11] sm:$0x1] (!%p238_p2), %vm279_vm1, %v1106_v2  ;;  %v1005_v8 = vld [vmem:[%s1227_s1 + $0x8] sm:$0xf] (!%p238_p2)  ;;  %v572_v12 = vld [vmem:[%s1231_s5] sm:$0xff] (!%p238_p2)  ;;  %vm1107_vm3 = vmmov (!%p238_p2), 0  }
   0x8   : > { %1044 = vmatprep.subr.msk.mxu0 (!%p238_p2), %vm300_vm0, %v289_v1  ;;  %1055 = vmatpush3.msra.mxu1 (!%p238_p2), %v572_v12  ;;  %v646_v13 = vld [vmem:[%s1232_s6] sm:$0xf] (!%p238_p2)  ;;  %vm562_vm4 = vcmask (!%p238_p2), 64512   ;;  %v724_v31 = vshrl.u32 (!%p238_p2), %v723_v30, 7 }
   0x9   : > { %1056 = vmatprep.mubr.msk.f32.mxu1 (!%p238_p2), %vm1107_vm3, %v1106_v2  ;;  %1059 = vmatprep.subr.mxu1 (!%p238_p2), %v1106_v2  ;;  %v1009_v14 = vld [vmem:[%s1228_s2] ss:$0 sm:$0xff] (!%p238_p2) }
   0xa   : > { %v725_v32 = vsub.s32 (!%p238_p2), 0, %v724_v31  ;;  %v1016_v56 = vld [vmem:[%s1229_s3] ss:$0 sm:$0xff] (!%p238_p2) }
   0xb   : > { %v1017_v59 = vld [vmem:[%s1230_s4] ss:$0 sm:$0xff] (!%p238_p2) }
   0xd   : > { %s1235_s25 = smov (!%p269_p3, %s989_s25), 3 }
   0xe   : > { %s1020_s30 = sshll.u32 %s1235_s25, 4 }
   0xf   : > { %s273_s10 = scalar_lea.vmem %s1226_s0, %s1020_s30  ;;  %s278_s27 = scalar_lea.vmem %s1233_s7, %s1020_s30 }
  0x10   : > { %v282_v3 = vld [vmem:[%s273_s10] sm:$0xff]  ;;  %v283_v4 = vld [vmem:[%s273_s10 + $0x8] sm:$0xff] }
  0x11   : > { %285 = vst.msk [vmem:[#allocation2 + $0x1] sm:$0xff] %vm284_vm2, %v282_v3  ;;  %286 = vst.msk [vmem:[#allocation2 + $0x9] sm:$0xff] %vm284_vm2, %v283_v4 }
  0x18   : > { %v290_v5 = vld [vmem:[#allocation2 + $0x1] sm:$0xff]  ;;  %v291_v6 = vld [vmem:[#allocation2 + $0x9] sm:$0xff] }
  0x19   : > { %v287_v7 = vld [vmem:[#allocation2] sm:$0xff]  ;;  %1041 = vmatprep.mubr.msk.f32.mxu0 %vm284_vm2, %v290_v5  ;;  %v288_v9 = vld [vmem:[#allocation2 + $0x8] sm:$0xff] }
  0x1a   : > { %1042 = vmatmul.mubr.msk.f32.vlgmr.msra.gmra.mrb[0].mxu0 %vm284_vm2, %v291_v6  ;;  %v463_v10 = vld [vmem:[#allocation2 + $0x2] sm:$0xff]  ;;  %v464_v11 = vld [vmem:[#allocation2 + $0xa] sm:$0xff] }
  0x1b   : > { %1045 = vmatpush3.msk.msra.mxu0 %vm300_vm0, %v289_v1  ;;  %1046 = vmatprep.mubr.msk.f32.mxu0 %vm284_vm2, %v287_v7 }
  0x1c   : > { %1049 = vmatprep.subr.msk.mxu0 %vm300_vm0, %v1005_v8 }
  0x22   : > { %1047 = vmatmul.mubr.msk.f32.vlgmr.msra.gmra.mrb[0].mxu0 %vm284_vm2, %v288_v9 }
  0x23   : > { %1050 = vmatpush3.msk.msra.mxu0 %vm300_vm0, %v1005_v8  ;;  %1051 = vmatprep.mubr.msk.f32.mxu0 %vm284_vm2, %v463_v10 }
  0x24   : > { %1069 = vmatprep.subr.mxu0 %v1106_v2 }
  0x2a   : > { %1052 = vmatmul.mubr.msk.f32.vlgmr.msra.gmra.mrb[0].mxu0 %vm284_vm2, %v464_v11 }
  0x2b   : > { %1071 = vmatprep.mubr.msk.f32.mxu0 %vm1107_vm3, %v1106_v2  ;;  %1070 = vmatpush3.msk.msra.mxu0 %vm300_vm0, %v646_v13 }
  0xfd   : > { %v1053_v15 = vpop.f32.mrb[0].mxu0 }
  0xfe   : > { %v561_v16 = vadd.f32 %v1053_v15, %v1009_v14  ;;  %v542_v17 = vpop.f32.mrb[1].mxu0 }
  0xff   : > { %v560_v18 = vadd.f32 %v1009_v14, %v542_v17 }
 0x100   : > { %v564_v19 = vsel %vm562_vm4, %v561_v16, 0.0 }
 0x101   : > { %v563_v20 = vsel %vm562_vm4, %v560_v18, 0.0 }
 0x102   : > { %v565_v21 = vadd.f32 %v564_v19, %v563_v20 }
 0x104   : > { %v566_v22 = vrot.slane %v565_v21, 4 }
 0x106   : > { %v567_v23 = vadd.f32 %v566_v22, %v565_v21 }
 0x108   : > { %v568_v24 = vrot.slane %v567_v23, 2 }
 0x10a   : > { %v569_v25 = vadd.f32 %v568_v24, %v567_v23 }
 0x10c   : > { %v570_v26 = vrot.slane %v569_v25, 1 }
 0x10e   : > { %v571_v27 = vadd.f32 %v570_v26, %v569_v25 }
 0x110   : > { %1057 = vmatmul.mubr.msk.f32.vlgmr.msra.gmra.mrb[0].mxu1 %vm562_vm4, %v571_v27 }
 0x111   : > { %1060 = vmatpush3.msk.msra.mxu1 %vm300_vm0, %v646_v13  ;;  %1061 = vmatprep.mubr.msk.f32.mxu1 %vm1107_vm3, %v1106_v2 }
 0x112   : > { %1064 = vmatprep.subr.mxu1 %v1106_v2 }
 0x1e3   : > { %v642_v28 = vpop.f32.mrb[0].mxu1 }
 0x1e4   : > { %v1058_v29 = vpop.f32.mrb[1].mxu1  ;;  %1062 = vmatmul.mubr.msk.f32.vlgmr.msra.gmra.mrb[2].mxu1 %vm284_vm2, %v642_v28 }
 0x1e5   : > { %1065 = vmatpush3.msra.mxu1 %v572_v12  ;;  %1066 = vmatprep.mubr.msk.f32.mxu1 %vm1107_vm3, %v1106_v2 }
 0x2b7   : > { %v719_v33 = vpop.f32.mrb[2].mxu1 }
 0x2b8   : > { %v726_v34 = vrot.slane %v719_v33, %v725_v32  ;;  %v1063_v35 = vpop.f32.mrb[3].mxu1 }
 0x2ba   : > { %v727_v36 = vsub.f32 %v560_v18, %v726_v34  ;;  %v728_v37 = vsub.f32 %v561_v16, %v726_v34 }
 0x2bc   : > { %v729_v38 = vmul.f32 %v727_v36, %v727_v36  ;;  %v730_v39 = vmul.f32 %v728_v37, %v728_v37 }
 0x2be   : > { %v731_v40 = vsel %vm562_vm4, %v729_v38, 0.0  ;;  %v732_v41 = vsel %vm562_vm4, %v730_v39, 0.0 }
 0x2bf   : > { %v733_v42 = vadd.f32 %v732_v41, %v731_v40 }
 0x2c1   : > { %v734_v43 = vrot.slane %v733_v42, 4 }
 0x2c3   : > { %v735_v44 = vadd.f32 %v734_v43, %v733_v42 }
 0x2c5   : > { %v736_v45 = vrot.slane %v735_v44, 2 }
 0x2c7   : > { %v737_v46 = vadd.f32 %v736_v45, %v735_v44 }
 0x2c9   : > { %v738_v47 = vrot.slane %v737_v46, 1 }
 0x2cb   : > { %v739_v48 = vadd.f32 %v738_v47, %v737_v46 }
 0x2cd   : > { %1067 = vmatmul.mubr.msk.f32.vlgmr.msra.gmra.mrb[4].mxu1 %vm562_vm4, %v739_v48 }
 0x3a0   : > { %v809_v49 = vpop.f32.mrb[4].mxu1 }
 0x3a1   : > { %v1068_v50 = vpop.f32.mrb[5].mxu1  ;;  %1072 = vmatmul.mubr.msk.f32.vlgmr.msra.gmra.mrb[2].mxu0 %vm284_vm2, %v809_v49 }
 0x474   : > { %v882_v51 = vpop.f32.mrb[2].mxu0 }
 0x475   : > { %v886_v52 = vadd.f32 1e-05, %v882_v51  ;;  %v1073_v53 = vpop.f32.mrb[3].mxu0 }
 0x477   : > { %1088 = vrsqrt.f32 %v886_v52 }
 0x481   : > { %v1089_v54 = vpop.eup %1088 }
 0x482   : > { %v891_v55 = vrot.slane %v1089_v54, %v725_v32 }
 0x484   : > { %v892_v57 = vmul.f32 %v891_v55, %v727_v36  ;;  %v893_v58 = vmul.f32 %v891_v55, %v728_v37 }
 0x486   : > { %v901_v60 = vmul.f32 %v1016_v56, %v892_v57  ;;  %v902_v61 = vmul.f32 %v1016_v56, %v893_v58 }
 0x488   : > { %v910_v62 = vadd.f32 %v1017_v59, %v901_v60  ;;  %v911_v63 = vadd.f32 %v1017_v59, %v902_v61 }
 0x48a   : > { %v912_v0 = vmul.f32 1.442695, %v910_v62  ;;  %v914_v1 = vmul.f32 1.442695, %v911_v63  ;;  %v926_v10 = vmul.f32 2.0, %v910_v62  ;;  %v927_v12 = vmul.f32 2.0, %v911_v63 }
 0x48c   : > { %1090 = vpow2.f32 %v912_v0 }
 0x48d   : > { %1092 = vpow2.f32 %v914_v1 }
 0x496   : > { %v1091_v2 = vpop.eup %1090 }
 0x497   : > { %v1093_v3 = vpop.eup %1092  ;;  %v916_v4 = vadd.f32 2.0, %v1091_v2 }
 0x498   : > { %v917_v5 = vadd.f32 2.0, %v1093_v3 }
 0x499   : > { %v918_v6 = vmul.f32 %v1091_v2, %v916_v4 }
 0x49a   : > { %v919_v7 = vmul.f32 %v1093_v3, %v917_v5 }
 0x49b   : > { %v920_v8 = vadd.f32 2.0, %v918_v6 }
 0x49c   : > { %v921_v9 = vadd.f32 2.0, %v919_v7 }
 0x49d   : > { %1094 = vrcp.f32 %v920_v8 }
 0x49e   : > { %1096 = vrcp.f32 %v921_v9 }
 0x4a7   : > { %v1095_v11 = vpop.eup %1094 }
 0x4a8   : > { %v1097_v13 = vpop.eup %1096  ;;  %v928_v14 = vmul.f32 %v1095_v11, %v926_v10 }
 0x4a9   : > { %v929_v15 = vmul.f32 %v1097_v13, %v927_v12 }
 0x4aa   : > { %v930_v16 = vsub.f32 %v910_v62, %v928_v14 }
 0x4ab   : > { %v931_v17 = vsub.f32 %v911_v63, %v929_v15 }
 0x4ac   : > { %932 = vst.msk [vmem:[%s278_s27] sm:$0xff] %vm562_vm4, %v930_v16 }
 0x4ad   : > { %933 = vst.msk [vmem:[%s278_s27 + $0x8] sm:$0xff] %vm562_vm4, %v931_v17 }
 0x4ae PF: > { %s17_s24 = sadd.s32 1, %s1104_s24  }
 0x4af   : > { %p14_p4 = scmp.ge.s32.totalorder %s17_s24, 6  }
 0x4b1   :  { %16 = sbr.rel (!%p14_p4) target bundleno = 1 (0x1), region = 80 }

</bundles_post_ra>
